<compile_context>
chip_gen: v5e
topology: v5e:2x2
jax: 0.10.0
libtpu: 0.0.40
codegen_flags: <defaults>
</compile_context>

<pallas_src>
import math

import jax
import jax.numpy as jnp
from jax.experimental import pallas as pl
from jax.experimental.pallas import tpu as pltpu


def _round_up(x, m):
    return ((x + m - 1) // m) * m


def _vmem_capacity_bytes():
    try:
        return int(pltpu.get_tpu_info().vmem_capacity_bytes)
    except Exception:
        return 64 * 1024 * 1024  # conservative (v7x per-TC physical VMEM)


def _divisor_tiles(dim, cap):
    """Multiples of 128 that divide `dim` (a 128-multiple), <= cap, descending."""
    start = min(cap, dim)
    start -= start % 128
    start = max(start, 128)
    return [c for c in range(start, 127, -128) if dim % c == 0]


def _linear_kernel_f32out(x_ref, w_ref, o_ref):
    """o[tm, tn] accumulated directly in f32 across the K grid axis (no scratch)."""
    k = pl.program_id(2)
    p = jnp.dot(x_ref[...], w_ref[...], preferred_element_type=jnp.float32)

    @pl.when(k == 0)
    def _init():
        o_ref[...] = p

    @pl.when(k > 0)
    def _acc():
        o_ref[...] += p


def _linear_kernel_scratch(x_ref, w_ref, o_ref, acc_ref):
    """f32 VMEM accumulator; cast to the (non-f32) output dtype on the last K step."""
    @pl.when(pl.program_id(2) == 0)
    def _init():
        acc_ref[...] = jnp.zeros_like(acc_ref)

    acc_ref[...] += jnp.dot(x_ref[...], w_ref[...], preferred_element_type=jnp.float32)

    @pl.when(pl.program_id(2) == pl.num_programs(2) - 1)
    def _finalize():
        o_ref[...] = acc_ref[...].astype(o_ref.dtype)


def prepare_ffn_weight(weight, compute_dtype=jnp.bfloat16):
    """One-time weight prep (hoist out of the per-call hot path).

    weight: [out_size, in_size] (PyTorch nn.Linear layout)
    returns (w_kn [Kp, Np] in compute_dtype, out_size, in_size) with Kp/Np 128-multiples,
    zero-padded, transposed to the MXU-native [K, N] orientation.
    """
    out_size, in_size = weight.shape
    kp = _round_up(in_size, 128)
    np_ = _round_up(out_size, 128)
    w = weight.astype(compute_dtype).T  # [K, N]
    if (kp, np_) != (in_size, out_size):
        w = jnp.pad(w, ((0, kp - in_size), (0, np_ - out_size)))
    return w, out_size, in_size


def ffn_forward(x, w_kn, out_size, *, tm=1024, tn=1024, tk=1024):
    """Pallas equivalent of FeedForwardNetwork.forward: y = x @ weight.T (no bias).

    x:     [..., in_size]
    w_kn:  [Kp, Np] prepared weight from prepare_ffn_weight (transposed, padded, bf16)
    returns [..., out_size] in x.dtype
    """
    in_size = x.shape[-1]
    kp, np_ = w_kn.shape
    assert kp >= in_size and kp % 128 == 0 and np_ % 128 == 0 and np_ >= out_size

    batch_dims = x.shape[:-1]
    m = int(math.prod(batch_dims)) if batch_dims else 1
    out_dtype = x.dtype

    # bf16 at the pallas_call boundary; f32 accumulation inside the kernel.
    x2d = x.reshape(m, in_size).astype(w_kn.dtype)
    if kp != in_size:
        # K padding must be zeros for a correct reduction (weight K-pad rows are zero too).
        x2d = jnp.pad(x2d, ((0, 0), (0, kp - in_size)))

    in_bytes = x2d.dtype.itemsize
    out_bytes = jnp.dtype(out_dtype).itemsize
    sub = 16 if in_bytes == 2 else 8  # bf16 packs 2 rows per sublane

    # Tile selection: never over-pad M (edge blocks are masked); tk/tn are the largest
    # 128-multiples dividing the padded K/N dims, capped at the requested sizes.
    tm = max(sub, min(_round_up(tm, sub), _round_up(m, sub)))
    tk_cands = _divisor_tiles(kp, tk)
    tn_cands = _divisor_tiles(np_, tn)
    tk_i = tn_i = 0
    tk, tn = tk_cands[0], tn_cands[0]

    use_scratch = out_dtype != jnp.float32

    def footprint(tm_, tn_, tk_):
        f = 2 * (tm_ * tk_ + tk_ * tn_) * in_bytes  # double-buffered x and w tiles
        f += 2 * tm_ * tn_ * out_bytes              # double-buffered output tile
        if use_scratch:
            f += tm_ * tn_ * 4                      # f32 accumulator
        return f

    # Generation-aware VMEM budget: ~40 MiB on v7x (64 MiB/TC), ~80 MiB on v5e/v6e (128 MiB).
    vmem_cap = _vmem_capacity_bytes()
    budget = int(vmem_cap * 0.625)
    while footprint(tm, tn, tk) > budget:
        if tk_i + 1 < len(tk_cands):
            tk_i += 1
            tk = tk_cands[tk_i]
        elif tn_i + 1 < len(tn_cands):
            tn_i += 1
            tn = tn_cands[tn_i]
        elif tm > sub:
            tm = max(sub, _round_up(tm // 2, sub))
        else:
            break

    grid_m = pl.cdiv(m, tm)
    grid_n = np_ // tn
    # v7x has 2 TensorCores: make sure a 'parallel' axis has >= 2 blocks for small-M shapes.
    if grid_m == 1 and grid_n == 1 and np_ >= 256:
        smaller = [c for c in tn_cands if c <= np_ // 2]
        if smaller:
            tn = smaller[0]
            grid_n = np_ // tn
    grid_k = kp // tk
    grid = (grid_m, grid_n, grid_k)

    fp = footprint(tm, tn, tk)
    vmem_limit = min(vmem_cap * 3 // 4, max(fp + (16 << 20), 32 << 20))

    cost = pl.CostEstimate(
        flops=2 * m * np_ * kp,
        transcendentals=0,
        bytes_accessed=int(m * kp * in_bytes * grid_n
                           + kp * np_ * in_bytes * grid_m
                           + m * np_ * out_bytes),
    )

    in_specs = [
        pl.BlockSpec((tm, tk), lambda i, j, k: (i, k)),  # activations [M, Kp]
        pl.BlockSpec((tk, tn), lambda i, j, k: (k, j)),  # weight [Kp, Np] (pre-transposed)
    ]
    out_spec = pl.BlockSpec((tm, tn), lambda i, j, k: (i, j))

    if use_scratch:
        kernel = _linear_kernel_scratch
        scratch = [pltpu.VMEM((tm, tn), jnp.float32)]
    else:
        kernel = _linear_kernel_f32out
        scratch = []

    out_padded = pl.pallas_call(
        kernel,
        out_shape=jax.ShapeDtypeStruct((m, np_), out_dtype),
        grid=grid,
        in_specs=in_specs,
        out_specs=out_spec,
        scratch_shapes=scratch,
        compiler_params=pltpu.CompilerParams(
            dimension_semantics=("parallel", "parallel", "arbitrary"),
            vmem_limit_bytes=int(vmem_limit),
        ),
        cost_estimate=cost,
    )(x2d, w_kn)

    out2d = out_padded[:, :out_size] if np_ != out_size else out_padded
    return out2d.reshape(*batch_dims, out_size)


def xavier_uniform_weight(key, out_size, in_size, dtype=jnp.float32):
    # nn.init.xavier_uniform_: U(-a, a), a = sqrt(6 / (fan_in + fan_out)), gain=1.
    bound = math.sqrt(6.0 / (in_size + out_size))
    return jax.random.uniform(
        key, (out_size, in_size), dtype=dtype, minval=-bound, maxval=bound
    )


if __name__ == "__main__":
    key = jax.random.PRNGKey(0)
    k_x, k_w, k_x2, k_w2 = jax.random.split(key, 4)

    # Demo consistent with the module's forward: x [batch, seq, input_size].
    batch, seq, input_size, output_size = 2, 8, 32, 64
    x = jax.random.normal(k_x, (batch, seq, input_size), dtype=jnp.float32)
    weight = xavier_uniform_weight(k_w, output_size, input_size)

    # One-time (hoisted) weight prep: transpose to [K, N], pad to 128-multiples, cast to bf16.
    w_kn, out_size, _ = prepare_ffn_weight(weight)

    out = jax.block_until_ready(ffn_forward(x, w_kn, out_size))
    assert out.shape == (batch, seq, output_size)
    assert out.dtype == x.dtype

    # Reference with matching numerics: bf16 operands, f32 accumulation.
    xb = x.astype(jnp.bfloat16).astype(jnp.float32)
    wb = weight.astype(jnp.bfloat16).astype(jnp.float32)
    ref = jnp.einsum("bsi,oi->bso", xb, wb)
    assert jnp.allclose(out, ref, atol=2e-3, rtol=2e-3)
    # Loose check against full-f32 math (PyTorch-equivalent semantics).
    ref_f32 = jnp.einsum("bsi,oi->bso", x, weight)
    assert jnp.allclose(out, ref_f32, atol=1e-1, rtol=1e-1)

    # Second check: multi-step grid (K accumulation), non-128 N, M not a tile multiple
    # (exercises the no-over-pad / masked edge-block path).
    M2, K2, N2 = 200, 384, 320
    x2 = jax.random.normal(k_x2, (M2, K2), dtype=jnp.float32)
    w2 = xavier_uniform_weight(k_w2, N2, K2)
    w2_kn, n2, _ = prepare_ffn_weight(w2)
    out2 = jax.block_until_ready(ffn_forward(x2, w2_kn, n2, tm=128, tn=128, tk=128))
    ref2 = jnp.einsum(
        "mk,nk->mn",
        x2.astype(jnp.bfloat16).astype(jnp.float32),
        w2.astype(jnp.bfloat16).astype(jnp.float32),
    )
    assert out2.shape == (M2, N2)
    assert jnp.allclose(out2, ref2, atol=2e-3, rtol=2e-3)

    print("KERNEL_OK")
</pallas_src>

<mosaic_0001>
module attributes {stable_mosaic.version = 11 : i64} {
  func.func @_linear_kernel_f32out(%arg0: i32, %arg1: i32, %arg2: i32, %arg3: memref<16x128xbf16, #tpu.memory_space<vmem>>, %arg4: memref<128x128xbf16, #tpu.memory_space<vmem>>, %arg5: memref<16x128xf32, #tpu.memory_space<vmem>>) attributes {dimension_semantics = [#tpu.dimension_semantics<parallel>, #tpu.dimension_semantics<parallel>, #tpu.dimension_semantics<arbitrary>], iteration_bounds = array<i64: 1, 1, 1>, scalar_prefetch = 0 : i64, scratch_operands = 0 : i64, tpu.core_type = #tpu.core_type<tc>, window_params = [{transform_indices = @transform_0, window_bounds = array<i64: 16, 128>}, {transform_indices = @transform_1, window_bounds = array<i64: 128, 128>}, {transform_indices = @transform_2, window_bounds = array<i64: 16, 128>}]} {
    %c0 = arith.constant 0 : index
    %c0_0 = arith.constant 0 : index
    %0 = vector.load %arg3[%c0, %c0_0] : memref<16x128xbf16, #tpu.memory_space<vmem>>, vector<16x128xbf16>
    %c0_1 = arith.constant 0 : index
    %c0_2 = arith.constant 0 : index
    %1 = vector.load %arg4[%c0_1, %c0_2] : memref<128x128xbf16, #tpu.memory_space<vmem>>, vector<128x128xbf16>
    %cst = arith.constant dense<0.000000e+00> : vector<16x128xf32>
    %2 = tpu.matmul %0, %1, %cst {dimension_numbers = #tpu.dot_dimension_numbers<[1], [0], [0], [1], [0, 0, 1, 1], [], []>} : vector<16x128xbf16>, vector<128x128xbf16>, vector<16x128xf32> -> vector<16x128xf32>
    %c0_i32 = arith.constant 0 : i32
    %3 = arith.cmpi eq, %arg2, %c0_i32 : i32
    %4 = arith.extui %3 : i1 to i32
    %c0_i32_3 = arith.constant 0 : i32
    %5 = arith.cmpi ne, %4, %c0_i32_3 : i32
    scf.if %5 {
      %c0_6 = arith.constant 0 : index
      %c0_7 = arith.constant 0 : index
      %9 = vector.load %arg5[%c0_6, %c0_7] : memref<16x128xf32, #tpu.memory_space<vmem>>, vector<16x128xf32>
      tpu.vector_store %arg5[%c0_6, %c0_7], %2 {strides = array<i32>} : memref<16x128xf32, #tpu.memory_space<vmem>>, vector<16x128xf32>,
    } else {
    }
    %c0_i32_4 = arith.constant 0 : i32
    %6 = arith.cmpi sgt, %arg2, %c0_i32_4 : i32
    %7 = arith.extui %6 : i1 to i32
    %c0_i32_5 = arith.constant 0 : i32
    %8 = arith.cmpi ne, %7, %c0_i32_5 : i32
    scf.if %8 {
      %c0_6 = arith.constant 0 : index
      %c0_7 = arith.constant 0 : index
      %9 = vector.load %arg5[%c0_6, %c0_7] : memref<16x128xf32, #tpu.memory_space<vmem>>, vector<16x128xf32>
      %10 = arith.addf %9, %2 : vector<16x128xf32>
      %c0_8 = arith.constant 0 : index
      %c0_9 = arith.constant 0 : index
      %11 = vector.load %arg5[%c0_8, %c0_9] : memref<16x128xf32, #tpu.memory_space<vmem>>, vector<16x128xf32>
      tpu.vector_store %arg5[%c0_8, %c0_9], %10 {strides = array<i32>} : memref<16x128xf32, #tpu.memory_space<vmem>>, vector<16x128xf32>,
    } else {
    }
    return
  }
  func.func @transform_0(%arg0: i32, %arg1: i32, %arg2: i32) -> (i32, i32) {
    %c0_i32 = arith.constant 0 : i32
    return %arg0, %arg2 : i32, i32
  }
  func.func @transform_1(%arg0: i32, %arg1: i32, %arg2: i32) -> (i32, i32) {
    %c0_i32 = arith.constant 0 : i32
    return %arg2, %arg1 : i32, i32
  }
  func.func @transform_2(%arg0: i32, %arg1: i32, %arg2: i32) -> (i32, i32) {
    %c0_i32 = arith.constant 0 : i32
    return %arg0, %arg1 : i32, i32
  }
}

</mosaic_0001>

<bundles_post_ra>
// kernel: tpu_custom_call.1
= control target key start
LH: loop header
LB: loop body
LE: loop exit
PB: predicated region body
PF: predicated region fallthrough
CT: control target
= control target key end

     0   :  { %7 = vsyncpa [#allocation3], 0  ;;  %s327_s0 = inlined_call_operand.hbm [shape: bf16[16,128], index: 0, kind: input, shape index: {}]   ;;  %s328_s1 = inlined_call_operand.hbm [shape: bf16[128,128], index: 1, kind: input, shape index: {}]   ;;  %s329_s2 = inlined_call_operand.hbm [shape: f32[16,128], index: 2, kind: output, shape index: {}]  }
   0x1   :  { %8 = vsyncpa [#allocation6], 0 }
   0x2   :  { %9 = vsyncpa [#allocation4], 0  ;;  %s14_s11 = sshll.u32 %s327_s0, 4  ;;  %s296_s12 = smov [#allocation2]   ;;  %s15_s11 = int_to_ptr.hbm [resolvable:$true] %s14_s11 }
   0x3   :  { %s16_s13 = sshll.u32 %s296_s12, 4  ;;  %s27_s16 = sshll.u32 %s328_s1, 4  ;;  %s17_s13 = int_to_ptr.vmem [resolvable:$true] %s16_s13  ;;  %s28_s16 = int_to_ptr.hbm [resolvable:$true] %s27_s16 }
   0x4   :  { %s297_s17 = smov 64   ;;  %s298_s18 = smov 4  }
   0x5   :  { %22 = dma.hbm_to_vmem [thread:$0]  %s15_s11, 128, %s17_s13, [#allocation3], %s297_s17, %s297_s17, %s298_s18  }
   0x6   :  { %s299_s19 = smov [#allocation5]  }
   0x7   :  { %s29_s20 = sshll.u32 %s299_s19, 4  ;;  %s30_s20 = int_to_ptr.vmem [resolvable:$true] %s29_s20 }
   0x8   :  { %35 = dma.hbm_to_vmem [thread:$0]  %s28_s16, 1024, %s30_s20, [#allocation6], %s297_s17, %s297_s17, %s298_s18  }
   0x9   :  { %290 = dma.done.wait [#allocation3], 128  }
   0xa   :  { %291 = vsyncadd [#allocation3], 4294967168 }
   0xb   :  { %292 = dma.done.wait [#allocation6], 1024  }
   0xc   :  { %293 = vsyncadd [#allocation6], 4294966272  ;;  %v210_v0 = vld [vmem:[#allocation5 + $0x38] sm:$0xff]  ;;  %v209_v1 = vld [vmem:[#allocation5 + $0x30] sm:$0xff]  ;;  %s300_s0 = smov [#allocation7]   ;;  %s152_s23 = sshll.u32 %s329_s2, 4  ;;  %s153_s23 = int_to_ptr.hbm [resolvable:$true] %s152_s23 }
   0xd   :  { %116 = vmatpush.bf16.msra.mxu0 %v210_v0  ;;  %v208_v2 = vld [vmem:[#allocation5 + $0x28] sm:$0xff]  ;;  %v207_v3 = vld [vmem:[#allocation5 + $0x20] sm:$0xff]  ;;  %v206_v4 = vld [vmem:[#allocation5 + $0x18] sm:$0xff]  ;;  %s150_s1 = sshll.u32 %s300_s0, 4  ;;  %s301_s24 = smov 128   ;;  %s151_s1 = int_to_ptr.vmem [resolvable:$true] %s150_s1 }
   0xe   :  { %v205_v5 = vld [vmem:[#allocation5 + $0x10] sm:$0xff]  ;;  %v204_v6 = vld [vmem:[#allocation5 + $0x8] sm:$0xff]  ;;  %v203_v7 = vld [vmem:[#allocation5] sm:$0xff]  ;;  %s302_s25 = smov 8  }
   0xf   :  { %v202_v8 = vld [vmem:[#allocation2] sm:$0xff] }
  0x11   :  { %117 = vmatpush.bf16.msra.mxu0 %v209_v1 }
  0x15   :  { %118 = vmatpush.bf16.msra.mxu0 %v208_v2 }
  0x19   :  { %119 = vmatpush.bf16.msra.mxu0 %v207_v3 }
  0x1d   :  { %120 = vmatpush.bf16.msra.mxu0 %v206_v4 }
  0x21   :  { %121 = vmatpush.bf16.msra.mxu0 %v205_v5 }
  0x25   :  { %122 = vmatpush.bf16.msra.mxu0 %v204_v6 }
  0x29   :  { %123 = vmatpush.bf16.msra.mxu0 %v203_v7 }
  0x2c   :  { %124 = vmatmul.bf16.vlgmr.msra.gmra.mxu0 %v202_v8 }
  0xa9   :  { %v125_v9 = vpop.f32.mrf.mxu0 }
  0xaa   :  { %134 = vst [vmem:[#allocation7] sm:$0xff] %v125_v9 }
  0xb1   :  { %v127_v10 = vpop.f32.mrf.mxu0 }
  0xb2   :  { %135 = vst [vmem:[#allocation7 + $0x8] sm:$0xff] %v127_v10 }
  0xb3   :  { %158 = dma.vmem_to_hbm [thread:$0]  %s151_s1, 256, %s153_s23, [#allocation4], %s301_s24, %s301_s24, %s302_s25  }
  0xb4   :  { %294 = dma.done.wait [#allocation4], 256  }
  0xb5   :  { %295 = vsyncadd [#allocation4], 4294967040 }
  0xb6   :  { %163 = vsyncpa [#allocation3], 1 }
  0xb7   :  { %164 = vsyncpa [#allocation6], 1 }
  0xb8   :  { %165 = vsyncpa [#allocation4], 1 }

</bundles_post_ra>
